<compile_context>
chip_gen: v7x
topology: tpu7x:2x2x1
jax: 0.10.0
libtpu: 0.0.40
codegen_flags: <defaults>
</compile_context>

<pallas_src>
import functools

import jax
import jax.numpy as jnp
from jax.experimental import pallas as pl
from jax.experimental.pallas import tpu as pltpu


def _round_up(n, m):
    return ((n + m - 1) // m) * m


# ---------------------------------------------------------------------------
# Fast path: whole batch resident in VMEM -> single grid step, fully fused.
# ---------------------------------------------------------------------------
def _fused_small_kernel(x_ref, w1_ref, b1_ref, wh_ref, bh_ref, advm_ref,
                        vsel_ref, q_ref, *, inv_count):
    h = jnp.dot(x_ref[...], w1_ref[...], preferred_element_type=jnp.float32)
    h = jnp.maximum(h + b1_ref[...], 0.0)                       # (B, HID_PAD)
    heads = jnp.dot(h, wh_ref[...],
                    preferred_element_type=jnp.float32) + bh_ref[...]
    # State value per row via resident one-hot selector (lane reduce, no iota).
    v = jnp.sum(heads * vsel_ref[...], axis=1, keepdims=True)   # (B, 1)
    # Global advantage mean over all (B, A) entries (advantage columns only).
    mean = jnp.sum(heads * advm_ref[...]) * inv_count
    # Columns >= A hold junk (col A becomes 2*V, padded cols V - mean); the
    # wrapper slices [:, :A], so this is intentional.
    q_ref[...] = heads + v - mean


# ---------------------------------------------------------------------------
# Tiled path: one pallas_call, grid = (2, n_tiles).
#   phase 0: accumulate the global advantage sum (row-masked) into VMEM scratch
#   phase 1: recompute trunk + heads, subtract the mean, write Q
# Output index_map (i * p, 0) -> the out block stays resident for all of
# phase 0 and is first flushed only after phase 1 has written real data.
# ---------------------------------------------------------------------------
def _fused_tiled_kernel(x_ref, w1_ref, b1_ref, wh_ref, bh_ref, advm_ref,
                        vsel_ref, q_ref, acc_ref, *, batch, tile_b, inv_count):
    p = pl.program_id(0)      # phase
    i = pl.program_id(1)      # batch tile

    h = jnp.dot(x_ref[...], w1_ref[...], preferred_element_type=jnp.float32)
    h = jnp.maximum(h + b1_ref[...], 0.0)
    heads = jnp.dot(h, wh_ref[...],
                    preferred_element_type=jnp.float32) + bh_ref[...]

    @pl.when((p == 0) & (i == 0))
    def _():
        acc_ref[...] = jnp.zeros_like(acc_ref)

    @pl.when(p == 0)
    def _():
        # Mask zero-padded batch rows (they give h = relu(b1) != 0).
        rows = jax.lax.broadcasted_iota(jnp.int32, (tile_b, 1), 0)
        valid = rows < (batch - i * tile_b)
        acc_ref[...] = acc_ref[...] + jnp.sum(
            jnp.where(valid, heads * advm_ref[...], 0.0))

    @pl.when(p == 1)
    def _():
        v = jnp.sum(heads * vsel_ref[...], axis=1, keepdims=True)
        mean = acc_ref[...] * inv_count               # (1,1) broadcasts
        # Columns >= A are junk; wrapper slices [:, :A].
        q_ref[...] = heads + v - mean


# ---------------------------------------------------------------------------
# One-time weight preparation (hoisted out of the per-step forward).
# ---------------------------------------------------------------------------
def prepare_params(params):
    w1, b1, wv, bv, wa, ba = params        # (in, out) weights, (1, out) biases
    obs_dim, hid = w1.shape
    A = wa.shape[1]
    f32 = jnp.float32
    HID_PAD = _round_up(hid, 128)
    HEAD_PAD = _round_up(A + 1, 128)       # cols [0, A) = advantage, col A = V

    w1p = jnp.zeros((obs_dim, HID_PAD), f32).at[:, :hid].set(w1.astype(f32))
    b1p = jnp.zeros((1, HID_PAD), f32).at[0, :hid].set(
        b1.reshape(-1).astype(f32))
    whp = (jnp.zeros((HID_PAD, HEAD_PAD), f32)
           .at[:hid, :A].set(wa.astype(f32))
           .at[:hid, A].set(wv[:, 0].astype(f32)))
    bhp = (jnp.zeros((1, HEAD_PAD), f32)
           .at[0, :A].set(ba.reshape(-1).astype(f32))
           .at[0, A].set(bv.reshape(-1)[0].astype(f32)))
    advm = jnp.zeros((1, HEAD_PAD), f32).at[0, :A].set(1.0)   # advantage cols
    vsel = jnp.zeros((1, HEAD_PAD), f32).at[0, A].set(1.0)    # value column

    return dict(w1p=w1p, b1p=b1p, whp=whp, bhp=bhp, advm=advm, vsel=vsel,
                obs_dim=obs_dim, hid_pad=HID_PAD, head_pad=HEAD_PAD,
                n_actions=A)


_FAST_PATH_VMEM_BUDGET = 8 * 1024 * 1024   # conservative vs v5e 16 MiB scoped default


def dueldqn_forward(x, prepped, *, tile_b=512, force_tiled=False):
    B, obs_dim = x.shape
    assert obs_dim == prepped["obs_dim"]
    A = prepped["n_actions"]
    HID_PAD = prepped["hid_pad"]
    HEAD_PAD = prepped["head_pad"]
    f32 = jnp.float32
    x = x.astype(f32)
    inv_count = 1.0 / float(B * A)

    weights = (prepped["w1p"], prepped["b1p"], prepped["whp"], prepped["bhp"],
               prepped["advm"], prepped["vsel"])

    # Rough VMEM footprint of the fast path (operands + intermediates), bytes.
    est = 4 * (B * obs_dim + B * HEAD_PAD + obs_dim * HID_PAD
               + HID_PAD * HEAD_PAD + 4 * HEAD_PAD + HID_PAD
               + 2 * B * max(HID_PAD, HEAD_PAD))

    if (not force_tiled) and est <= _FAST_PATH_VMEM_BUDGET:
        # ---- fast path: no batch grid, no padding of x at all ----
        kern = functools.partial(_fused_small_kernel, inv_count=inv_count)
        q = pl.pallas_call(
            kern,
            out_shape=jax.ShapeDtypeStruct((B, HEAD_PAD), f32),
            grid=(1,),
            in_specs=[
                pl.BlockSpec((B, obs_dim), lambda i: (0, 0)),        # x (full)
                pl.BlockSpec((obs_dim, HID_PAD), lambda i: (0, 0)),  # W1
                pl.BlockSpec((1, HID_PAD), lambda i: (0, 0)),        # b1
                pl.BlockSpec((HID_PAD, HEAD_PAD), lambda i: (0, 0)), # W heads
                pl.BlockSpec((1, HEAD_PAD), lambda i: (0, 0)),       # b heads
                pl.BlockSpec((1, HEAD_PAD), lambda i: (0, 0)),       # adv mask
                pl.BlockSpec((1, HEAD_PAD), lambda i: (0, 0)),       # V selector
            ],
            out_specs=pl.BlockSpec((B, HEAD_PAD), lambda i: (0, 0)),
            compiler_params=pltpu.CompilerParams(
                dimension_semantics=("arbitrary",)),
        )(x, *weights)
        return q[:, :A]

    # ---- tiled path: fused two-phase kernel ----
    TILE_B = _round_up(min(tile_b, _round_up(B, 8)), 8)
    B_pad = _round_up(B, TILE_B)
    n_tiles = B_pad // TILE_B
    xp = x if B_pad == B else jnp.zeros((B_pad, obs_dim), f32).at[:B].set(x)

    kern = functools.partial(_fused_tiled_kernel, batch=B, tile_b=TILE_B,
                             inv_count=inv_count)
    q = pl.pallas_call(
        kern,
        out_shape=jax.ShapeDtypeStruct((B_pad, HEAD_PAD), f32),
        grid=(2, n_tiles),
        in_specs=[
            pl.BlockSpec((TILE_B, obs_dim), lambda p, i: (i, 0)),     # x tile
            pl.BlockSpec((obs_dim, HID_PAD), lambda p, i: (0, 0)),    # W1
            pl.BlockSpec((1, HID_PAD), lambda p, i: (0, 0)),          # b1
            pl.BlockSpec((HID_PAD, HEAD_PAD), lambda p, i: (0, 0)),   # W heads
            pl.BlockSpec((1, HEAD_PAD), lambda p, i: (0, 0)),         # b heads
            pl.BlockSpec((1, HEAD_PAD), lambda p, i: (0, 0)),         # adv mask
            pl.BlockSpec((1, HEAD_PAD), lambda p, i: (0, 0)),         # V selector
        ],
        # (i * p, 0): block 0 stays resident through phase 0 (never flushed
        # with junk); each output tile is written to HBM exactly once.
        out_specs=pl.BlockSpec((TILE_B, HEAD_PAD), lambda p, i: (i * p, 0)),
        scratch_shapes=[pltpu.VMEM((1, 1), f32)],   # global advantage sum
        compiler_params=pltpu.CompilerParams(
            dimension_semantics=("arbitrary", "arbitrary")),
    )(xp, *weights)
    return q[:B, :A]


# ---------------------------------------------------------------------------
# Params + pure-JAX reference (mirrors the PyTorch module exactly).
# ---------------------------------------------------------------------------
def init_params(key, obs_dim, action_dim, hidden=64):
    """PyTorch Linear-style init: uniform(-1/sqrt(fan_in), 1/sqrt(fan_in))."""
    ks = jax.random.split(key, 6)

    def lin(kw, kb, fan_in, fan_out):
        bound = 1.0 / jnp.sqrt(jnp.float32(fan_in))
        w = jax.random.uniform(kw, (fan_in, fan_out), jnp.float32, -bound, bound)
        b = jax.random.uniform(kb, (1, fan_out), jnp.float32, -bound, bound)
        return w, b

    w1, b1 = lin(ks[0], ks[1], obs_dim, hidden)
    wv, bv = lin(ks[2], ks[3], hidden, 1)
    wa, ba = lin(ks[4], ks[5], hidden, action_dim)
    return (w1, b1, wv, bv, wa, ba)


def reference_forward(x, params):
    w1, b1, wv, bv, wa, ba = params
    y = jnp.maximum(x @ w1 + b1, 0.0)
    sv = y @ wv + bv
    adv = y @ wa + ba
    return sv + (adv - adv.mean())


if __name__ == "__main__":
    key = jax.random.PRNGKey(0)
    kx1, kx2, kp = jax.random.split(key, 3)

    obs_dim, action_dim = 32, 4
    params = init_params(kp, obs_dim, action_dim)
    prepped = prepare_params(params)          # fused/padded weights built once

    # Small batch -> single fused kernel, fast path (no grid, no padding).
    x1 = jax.random.normal(kx1, (8, obs_dim), jnp.float32)
    out1 = jax.block_until_ready(dueldqn_forward(x1, prepped))
    ref1 = reference_forward(x1, params)
    assert out1.shape == (8, action_dim)
    assert jnp.allclose(out1, ref1, atol=1e-5, rtol=1e-5), "fast path mismatch"

    # Ragged larger batch -> fused two-phase tiled path (forced for coverage).
    x2 = jax.random.normal(kx2, (300, obs_dim), jnp.float32)
    out2 = jax.block_until_ready(
        dueldqn_forward(x2, prepped, tile_b=128, force_tiled=True))
    ref2 = reference_forward(x2, params)
    assert out2.shape == (300, action_dim)
    assert jnp.allclose(out2, ref2, atol=1e-5, rtol=1e-5), "tiled path mismatch"

    print("KERNEL_OK")
</pallas_src>

<mosaic_0001>
module attributes {stable_mosaic.version = 11 : i64} {
  func.func @_fused_small_kernel(%arg0: i32, %arg1: memref<8x32xf32, #tpu.memory_space<vmem>>, %arg2: memref<32x128xf32, #tpu.memory_space<vmem>>, %arg3: memref<1x128xf32, #tpu.memory_space<vmem>>, %arg4: memref<128x128xf32, #tpu.memory_space<vmem>>, %arg5: memref<1x128xf32, #tpu.memory_space<vmem>>, %arg6: memref<1x128xf32, #tpu.memory_space<vmem>>, %arg7: memref<1x128xf32, #tpu.memory_space<vmem>>, %arg8: memref<8x128xf32, #tpu.memory_space<vmem>>) attributes {dimension_semantics = [#tpu.dimension_semantics<arbitrary>], iteration_bounds = array<i64: 1>, scalar_prefetch = 0 : i64, scratch_operands = 0 : i64, tpu.core_type = #tpu.core_type<tc>, window_params = [{pipeline_mode = #tpu.pipeline_mode<synchronous>, transform_indices = @transform_0, window_bounds = array<i64: 8, 32>}, {pipeline_mode = #tpu.pipeline_mode<synchronous>, transform_indices = @transform_1, window_bounds = array<i64: 32, 128>}, {pipeline_mode = #tpu.pipeline_mode<synchronous>, transform_indices = @transform_2, window_bounds = array<i64: 1, 128>}, {pipeline_mode = #tpu.pipeline_mode<synchronous>, transform_indices = @transform_3, window_bounds = array<i64: 128, 128>}, {pipeline_mode = #tpu.pipeline_mode<synchronous>, transform_indices = @transform_4, window_bounds = array<i64: 1, 128>}, {pipeline_mode = #tpu.pipeline_mode<synchronous>, transform_indices = @transform_5, window_bounds = array<i64: 1, 128>}, {pipeline_mode = #tpu.pipeline_mode<synchronous>, transform_indices = @transform_6, window_bounds = array<i64: 1, 128>}, {pipeline_mode = #tpu.pipeline_mode<synchronous>, transform_indices = @transform_7, window_bounds = array<i64: 8, 128>}]} {
    %c0 = arith.constant 0 : index
    %c0_0 = arith.constant 0 : index
    %0 = vector.load %arg1[%c0, %c0_0] : memref<8x32xf32, #tpu.memory_space<vmem>>, vector<8x32xf32>
    %c0_1 = arith.constant 0 : index
    %c0_2 = arith.constant 0 : index
    %1 = vector.load %arg2[%c0_1, %c0_2] : memref<32x128xf32, #tpu.memory_space<vmem>>, vector<32x128xf32>
    %cst = arith.constant dense<0.000000e+00> : vector<8x128xf32>
    %2 = tpu.matmul %0, %1, %cst {dimension_numbers = #tpu.dot_dimension_numbers<[1], [0], [0], [1], [0, 0, 1, 1], [], []>} : vector<8x32xf32>, vector<32x128xf32>, vector<8x128xf32> -> vector<8x128xf32>
    %c0_3 = arith.constant 0 : index
    %c0_4 = arith.constant 0 : index
    %3 = vector.load %arg3[%c0_3, %c0_4] : memref<1x128xf32, #tpu.memory_space<vmem>>, vector<1x128xf32>
    %4 = vector.broadcast %3 : vector<1x128xf32> to vector<8x128xf32>
    %5 = arith.addf %2, %4 : vector<8x128xf32>
    %cst_5 = arith.constant 0.000000e+00 : f32
    %6 = vector.broadcast %cst_5 : f32 to vector<8x128xf32>
    %7 = arith.maximumf %5, %6 : vector<8x128xf32>
    %c0_6 = arith.constant 0 : index
    %c0_7 = arith.constant 0 : index
    %8 = vector.load %arg4[%c0_6, %c0_7] : memref<128x128xf32, #tpu.memory_space<vmem>>, vector<128x128xf32>
    %cst_8 = arith.constant dense<0.000000e+00> : vector<8x128xf32>
    %9 = tpu.matmul %7, %8, %cst_8 {dimension_numbers = #tpu.dot_dimension_numbers<[1], [0], [0], [1], [0, 0, 1, 1], [], []>} : vector<8x128xf32>, vector<128x128xf32>, vector<8x128xf32> -> vector<8x128xf32>
    %c0_9 = arith.constant 0 : index
    %c0_10 = arith.constant 0 : index
    %10 = vector.load %arg5[%c0_9, %c0_10] : memref<1x128xf32, #tpu.memory_space<vmem>>, vector<1x128xf32>
    %11 = vector.broadcast %10 : vector<1x128xf32> to vector<8x128xf32>
    %12 = arith.addf %9, %11 : vector<8x128xf32>
    %c0_11 = arith.constant 0 : index
    %c0_12 = arith.constant 0 : index
    %13 = vector.load %arg7[%c0_11, %c0_12] : memref<1x128xf32, #tpu.memory_space<vmem>>, vector<1x128xf32>
    %14 = vector.broadcast %13 : vector<1x128xf32> to vector<8x128xf32>
    %15 = arith.mulf %12, %14 : vector<8x128xf32>
    %cst_13 = arith.constant dense<0.000000e+00> : vector<8xf32>
    %16 = vector.multi_reduction <add>, %15, %cst_13 [1] : vector<8x128xf32> to vector<8xf32>
    %17 = vector.shape_cast %16 : vector<8xf32> to vector<8x1xf32>
    %c0_14 = arith.constant 0 : index
    %c0_15 = arith.constant 0 : index
    %18 = vector.load %arg6[%c0_14, %c0_15] : memref<1x128xf32, #tpu.memory_space<vmem>>, vector<1x128xf32>
    %19 = vector.broadcast %18 : vector<1x128xf32> to vector<8x128xf32>
    %20 = arith.mulf %12, %19 : vector<8x128xf32>
    %21 = vector.shape_cast %20 : vector<8x128xf32> to vector<1x8x128xf32>
    %cst_16 = arith.constant dense<0.000000e+00> : vector<1xf32>
    %22 = vector.multi_reduction <add>, %21, %cst_16 [1, 2] : vector<1x8x128xf32> to vector<1xf32>
    %23 = vector.shape_cast %22 : vector<1xf32> to vector<1x1x1xf32>
    %24 = vector.extract %23[0, 0, 0] : f32 from vector<1x1x1xf32>
    %cst_17 = arith.constant 3.125000e-02 : f32
    %25 = arith.mulf %24, %cst_17 : f32
    %26 = vector.broadcast %17 : vector<8x1xf32> to vector<8x128xf32>
    %27 = arith.addf %12, %26 : vector<8x128xf32>
    %28 = vector.broadcast %25 : f32 to vector<8x128xf32>
    %29 = arith.subf %27, %28 : vector<8x128xf32>
    %c0_18 = arith.constant 0 : index
    %c0_19 = arith.constant 0 : index
    %30 = vector.load %arg8[%c0_18, %c0_19] : memref<8x128xf32, #tpu.memory_space<vmem>>, vector<8x128xf32>
    tpu.vector_store %arg8[%c0_18, %c0_19], %29 {strides = array<i32>} : memref<8x128xf32, #tpu.memory_space<vmem>>, vector<8x128xf32>,
    return
  }
  func.func @transform_0(%arg0: i32) -> (i32, i32) {
    %c0_i32 = arith.constant 0 : i32
    %c0_i32_0 = arith.constant 0 : i32
    %c0_i32_1 = arith.constant 0 : i32
    return %c0_i32, %c0_i32_0 : i32, i32
  }
  func.func @transform_1(%arg0: i32) -> (i32, i32) {
    %c0_i32 = arith.constant 0 : i32
    %c0_i32_0 = arith.constant 0 : i32
    %c0_i32_1 = arith.constant 0 : i32
    return %c0_i32, %c0_i32_0 : i32, i32
  }
  func.func @transform_2(%arg0: i32) -> (i32, i32) {
    %c0_i32 = arith.constant 0 : i32
    %c0_i32_0 = arith.constant 0 : i32
    %c0_i32_1 = arith.constant 0 : i32
    return %c0_i32, %c0_i32_0 : i32, i32
  }
  func.func @transform_3(%arg0: i32) -> (i32, i32) {
    %c0_i32 = arith.constant 0 : i32
    %c0_i32_0 = arith.constant 0 : i32
    %c0_i32_1 = arith.constant 0 : i32
    return %c0_i32, %c0_i32_0 : i32, i32
  }
  func.func @transform_4(%arg0: i32) -> (i32, i32) {
    %c0_i32 = arith.constant 0 : i32
    %c0_i32_0 = arith.constant 0 : i32
    %c0_i32_1 = arith.constant 0 : i32
    return %c0_i32, %c0_i32_0 : i32, i32
  }
  func.func @transform_5(%arg0: i32) -> (i32, i32) {
    %c0_i32 = arith.constant 0 : i32
    %c0_i32_0 = arith.constant 0 : i32
    %c0_i32_1 = arith.constant 0 : i32
    return %c0_i32, %c0_i32_0 : i32, i32
  }
  func.func @transform_6(%arg0: i32) -> (i32, i32) {
    %c0_i32 = arith.constant 0 : i32
    %c0_i32_0 = arith.constant 0 : i32
    %c0_i32_1 = arith.constant 0 : i32
    return %c0_i32, %c0_i32_0 : i32, i32
  }
  func.func @transform_7(%arg0: i32) -> (i32, i32) {
    %c0_i32 = arith.constant 0 : i32
    %c0_i32_0 = arith.constant 0 : i32
    %c0_i32_1 = arith.constant 0 : i32
    return %c0_i32, %c0_i32_0 : i32, i32
  }
}

</mosaic_0001>

<bundles_post_ra>
// kernel: tpu_custom_call.1
= control target key start
LH: loop header
LB: loop body
LE: loop exit
PB: predicated region body
PF: predicated region fallthrough
CT: control target
= control target key end

     0   :  { %12 = vsyncpa [#allocation3], 0  ;;  %s617_s0 = inlined_call_operand.hbm [shape: f32[8,32], index: 0, kind: input, shape index: {}]   ;;  %s618_s1 = inlined_call_operand.hbm [shape: f32[32,128], index: 1, kind: input, shape index: {}]   ;;  %s619_s2 = inlined_call_operand.vmem [shape: f32[1,128], index: 2, kind: input, shape index: {}]   ;;  %s620_s3 = inlined_call_operand.hbm [shape: f32[128,128], index: 3, kind: input, shape index: {}]   ;;  %s621_s4 = inlined_call_operand.vmem [shape: f32[1,128], index: 4, kind: input, shape index: {}]   ;;  %s622_s5 = inlined_call_operand.vmem [shape: f32[1,128], index: 5, kind: input, shape index: {}]   ;;  %s623_s6 = inlined_call_operand.vmem [shape: f32[1,128], index: 6, kind: input, shape index: {}]   ;;  %s624_s7 = inlined_call_operand.hbm [shape: f32[8,128], index: 7, kind: output, shape index: {}]  }
   0x1   :  { %13 = vsyncpa [#allocation6], 0 }
   0x2   :  { %14 = vsyncpa [#allocation4], 0  ;;  %s502_s24 = smov [#allocation5]   ;;  %s408_s28 = scalar_lea.hbm %s618_s1, 512 }
   0x3   :  { %s30_s25 = sshll.u32 %s502_s24, 4  ;;  %p409_p0 = scmp.ne.s32.totalorder %s618_s1, %s408_s28  ;;  %s31_s25 = int_to_ptr.vmem [resolvable:$true] %s30_s25 }
   0x4   :  { %p412_p1 = scmp.lt.u32.totalorder %s408_s28, %s618_s1 }
   0x6   :  { %p414_p2 = pnand %p412_p1, %p409_p0 }
   0x8   :  { %417 = shalt.err (!%p414_p2)
}
   0x9   :  { %s418_s10 = scalar_lea.vmem %s31_s25, 512  ;;  %p423_p4 = scmp.lt.s32.totalorder %s31_s25, %s31_s25 }
   0xa   :  { %p419_p3 = scmp.ne.s32.totalorder %s31_s25, %s418_s10  ;;  %p424_p5 = scmp.lt.s32.totalorder %s418_s10, %s418_s10 }
   0xc   :  { %p425_p6 = por %p424_p5, %p423_p4 }
   0xe   :  { %p426_p7 = pnand %p425_p6, %p419_p3 }
  0x10   :  { %429 = shalt.err (!%p426_p7)
}
  0x11   :  { %s503_s11 = smov 128   ;;  %s504_s12 = smov 8  }
  0x12   :  { %36 = dma.hbm_to_vmem [thread:$0]  %s618_s1, 512, %s31_s25, [#allocation6], %s503_s11, %s503_s11, %s504_s12  }
  0x13   :  { %s505_s15 = smov [#allocation2]   ;;  %s506_s17 = smov [#allocation7]  }
  0x14   :  { %s21_s16 = sshll.u32 %s505_s15, 4  ;;  %s44_s18 = sshll.u32 %s506_s17, 4  ;;  %s22_s16 = int_to_ptr.vmem [resolvable:$true] %s21_s16  ;;  %s45_s18 = int_to_ptr.vmem [resolvable:$true] %s44_s18 }
  0x15   :  { %s430_s21 = scalar_lea.hbm %s617_s0, 128 }
  0x16   :  { %p431_p8 = scmp.ne.s32.totalorder %s617_s0, %s430_s21  ;;  %p434_p9 = scmp.lt.u32.totalorder %s430_s21, %s617_s0 }
  0x18   :  { %p436_p10 = pnand %p434_p9, %p431_p8 }
  0x1a   :  { %439 = shalt.err (!%p436_p10)
}
  0x1b   :  { %s440_s1 = scalar_lea.vmem %s22_s16, 128  ;;  %p445_p12 = scmp.lt.s32.totalorder %s22_s16, %s22_s16 }
  0x1c   :  { %p441_p11 = scmp.ne.s32.totalorder %s22_s16, %s440_s1  ;;  %p446_p13 = scmp.lt.s32.totalorder %s440_s1, %s440_s1 }
  0x1e   :  { %p447_p0 = por %p446_p13, %p445_p12 }
  0x20   :  { %p448_p1 = pnand %p447_p0, %p441_p11 }
  0x22   :  { %451 = shalt.err (!%p448_p1)
}
  0x23   :  { %24 = dma.hbm_to_vmem [thread:$0]  %s617_s0, 128, %s22_s16, [#allocation3]  }
  0x24   :  { %s452_s30 = scalar_lea.hbm %s620_s3, 2048 }
  0x25   :  { %p453_p2 = scmp.ne.s32.totalorder %s620_s3, %s452_s30  ;;  %p456_p3 = scmp.lt.u32.totalorder %s452_s30, %s620_s3 }
  0x27   :  { %p458_p4 = pnand %p456_p3, %p453_p2 }
  0x29   :  { %461 = shalt.err (!%p458_p4)
}
  0x2a   :  { %s462_s14 = scalar_lea.vmem %s45_s18, 2048  ;;  %p467_p6 = scmp.lt.s32.totalorder %s45_s18, %s45_s18 }
  0x2b   :  { %p463_p5 = scmp.ne.s32.totalorder %s45_s18, %s462_s14  ;;  %p468_p7 = scmp.lt.s32.totalorder %s462_s14, %s462_s14 }
  0x2d   :  { %p469_p8 = por %p468_p7, %p467_p6 }
  0x2f   :  { %p470_p9 = pnand %p469_p8, %p463_p5 }
  0x31   :  { %473 = shalt.err (!%p470_p9)
}
  0x32   :  { %50 = dma.hbm_to_vmem [thread:$0]  %s620_s3, 2048, %s45_s18, [#allocation6], %s503_s11, %s503_s11, %s504_s12  }
  0x33   :  { %496 = dma.done.wait [#allocation3], 128  }
  0x34   :  { %497 = vsyncadd [#allocation3], 4294967168 }
  0x35   :  { %498 = dma.done.wait [#allocation6], 2560  }
  0x36   :  { %499 = vsyncadd [#allocation6], 4294964736  ;;  %v507_v0 = vmov 0.0|0.0   ;;  %vm508_vm0 = vmmov 0   ;;  %v509_v1 = vmov 0.0   ;;  %v67_v2 = vld [vmem:[#allocation5] sm:$0xff] }
  0x37   :  { %367 = vmatprep.subr.bf16.mxu0 %v507_v0  ;;  %329 = vmatprep.mubr.msk.f32.mxu0 %vm508_vm0, %v509_v1  ;;  %v68_v3 = vld [vmem:[#allocation5 + $0x8] sm:$0xff]  ;;  %v69_v4 = vld [vmem:[#allocation5 + $0x10] sm:$0xff]  ;;  %v70_v6 = vld [vmem:[#allocation5 + $0x18] sm:$0xff]  ;;  %vm78_vm1 = vcmask 261120  }
  0x38   :  { %373 = vmatprep.subr.bf16.mxu1 %v507_v0  ;;  %364 = vmatprep.mubr.msk.f32.mxu1 %vm508_vm0, %v509_v1  ;;  %v368_v5 = vpack.c.bf16 %v68_v3, %v67_v2  ;;  %v153_v7 = vld [vmem:[#allocation7] sm:$0xff]  ;;  %v154_v8 = vld [vmem:[#allocation7 + $0x8] sm:$0xff]  ;;  %v155_v9 = vld [vmem:[#allocation7 + $0x10] sm:$0xff]  ;;  %v371_v11 = vpack.c.bf16 %v70_v6, %v69_v4 }
  0x39   :  { %v156_v10 = vld [vmem:[#allocation7 + $0x18] sm:$0xff]  ;;  %v374_v12 = vpack.c.bf16 %v154_v8, %v153_v7  ;;  %v157_v14 = vld [vmem:[#allocation7 + $0x20] sm:$0xff]  ;;  %v158_v15 = vld [vmem:[#allocation7 + $0x28] sm:$0xff] }
  0x3a   :  { %369 = vmatpush3.bf16.msra.mxu0 %v368_v5  ;;  %v377_v13 = vpack.c.bf16 %v156_v10, %v155_v9  ;;  %v66_v16 = vld [vmem:[#allocation2] sm:$0xff]  ;;  %v380_v17 = vpack.c.bf16 %v158_v15, %v157_v14  ;;  %v159_v18 = vld [vmem:[#allocation7 + $0x30] sm:$0xff]  ;;  %v161_v21 = vld [vmem:[#allocation7 + $0x40] sm:$0xff] }
  0x3b   :  { %370 = vmatprep.subr.bf16.mxu0 %v507_v0  ;;  %375 = vmatpush3.bf16.msra.mxu1 %v374_v12  ;;  %v160_v19 = vld [vmem:[#allocation7 + $0x38] sm:$0xff]  ;;  %v162_v22 = vld [vmem:[#allocation7 + $0x48] sm:$0xff]  ;;  %v163_v24 = vld [vmem:[#allocation7 + $0x50] sm:$0xff] }
  0x3c   :  { %376 = vmatprep.subr.bf16.mxu1 %v507_v0  ;;  %v383_v20 = vpack.c.bf16 %v160_v19, %v159_v18  ;;  %v386_v23 = vpack.c.bf16 %v162_v22, %v161_v21  ;;  %v164_v25 = vld [vmem:[#allocation7 + $0x58] sm:$0xff]  ;;  %v165_v27 = vld [vmem:[#allocation7 + $0x60] sm:$0xff]  ;;  %v166_v28 = vld [vmem:[#allocation7 + $0x68] sm:$0xff] }
  0x3d   :  { %v389_v26 = vpack.c.bf16 %v164_v25, %v163_v24  ;;  %v392_v29 = vpack.c.bf16 %v166_v28, %v165_v27  ;;  %v167_v30 = vld [vmem:[#allocation7 + $0x70] sm:$0xff]  ;;  %v168_v31 = vld [vmem:[#allocation7 + $0x78] sm:$0xff] }
  0x3e   :  { %372 = vmatpush3.bf16.msra.mxu0 %v371_v11  ;;  %v395_v32 = vpack.c.bf16 %v168_v31, %v167_v30  ;;  %v294_v33 = vld [vmem:[%s619_s2] ss:$0 sm:$0xff] }
  0x3f   :  { %378 = vmatpush3.bf16.msra.mxu1 %v377_v13  ;;  %v296_v38 = vld [vmem:[%s621_s4] ss:$0 sm:$0xff] }
  0x40   :  { %379 = vmatprep.subr.bf16.mxu1 %v507_v0  ;;  %v298_v40 = vld [vmem:[%s622_s5] ss:$0 sm:$0xff]  ;;  %s510_s5 = smov [#allocation8]  }
  0x41   :  { %330 = vmatmul.mubr.msk.f32.vlgmr.msra.gmra.mrb[0].mxu0 %vm78_vm1, %v66_v16  ;;  %v297_v44 = vld [vmem:[%s623_s6] ss:$0 sm:$0xff]  ;;  %s284_s21 = sshll.u32 %s510_s5, 4  ;;  %s285_s21 = int_to_ptr.vmem [resolvable:$true] %s284_s21 }
  0x42   :  { %s474_s6 = scalar_lea.vmem %s285_s21, 128  ;;  %p479_p11 = scmp.lt.s32.totalorder %s285_s21, %s285_s21 }
  0x43   :  { %381 = vmatpush3.bf16.msra.mxu1 %v380_v17  ;;  %p475_p10 = scmp.ne.s32.totalorder %s285_s21, %s474_s6  ;;  %p480_p12 = scmp.lt.s32.totalorder %s474_s6, %s474_s6 }
  0x44   :  { %382 = vmatprep.subr.bf16.mxu1 %v507_v0 }
  0x45   :  { %p481_p13 = por %p480_p12, %p479_p11 }
  0x47   :  { %384 = vmatpush3.bf16.msra.mxu1 %v383_v20  ;;  %p482_p0 = pnand %p481_p13, %p475_p10 }
  0x48   :  { %385 = vmatprep.subr.bf16.mxu1 %v507_v0 }
  0x4b   :  { %387 = vmatpush3.bf16.msra.mxu1 %v386_v23 }
  0x4c   :  { %388 = vmatprep.subr.bf16.mxu1 %v507_v0 }
  0x4f   :  { %390 = vmatpush3.bf16.msra.mxu1 %v389_v26 }
  0x50   :  { %391 = vmatprep.subr.bf16.mxu1 %v507_v0 }
  0x53   :  { %393 = vmatpush3.bf16.msra.mxu1 %v392_v29 }
  0x54   :  { %394 = vmatprep.subr.bf16.mxu1 %v507_v0 }
  0x57   :  { %396 = vmatpush3.bf16.msra.mxu1 %v395_v32 }
 0x114   :  { %v148_v34 = vpop.f32.mrb[0].mxu0 }
 0x115   :  { %v149_v35 = vadd.f32 %v294_v33, %v148_v34  ;;  %v331_v36 = vpop.f32.mrb[1].mxu0 }
 0x117   :  { %v152_v37 = vmax.f32 %v149_v35, 0.0 }
 0x119   :  { %365 = vmatmul.mubr.f32.vlgmr.msra.gmra.mrb[0].mxu1 %v152_v37 }
 0x1ec   :  { %v242_v39 = vpop.f32.mrb[0].mxu1 }
 0x1ed   :  { %v243_v41 = vadd.f32 %v296_v38, %v242_v39  ;;  %v366_v42 = vpop.f32.mrb[1].mxu1 }
 0x1ef   :  { %v263_v43 = vmul.f32 %v298_v40, %v243_v41  ;;  %v253_v45 = vmul.f32 %v297_v44, %v243_v41 }
 0x1f1   :  { %264 = vadd.xlane.f32.xlu0 %v263_v43 }
 0x1f5   :  { %254 = vadd.xlane.f32.xlu0 %v253_v45 }
 0x27e   :  { %v265_v46 = vpop.xlane.xlu0 %264 }
 0x27f   :  { %v266_v47 = vrot.slane %v265_v46, 4 }
 0x281   :  { %v267_v48 = vadd.f32 %v266_v47, %v265_v46 }
 0x282   :  { %v255_v53 = vpop.xlane.xlu0 %254 }
 0x283   :  { %v268_v49 = vrot.slane %v267_v48, 2  ;;  %v274_v54 = vadd.f32 %v255_v53, %v243_v41 }
 0x285   :  { %v269_v50 = vadd.f32 %v268_v49, %v267_v48 }
 0x287   :  { %v270_v51 = vrot.slane %v269_v50, 1 }
 0x289   :  { %v271_v52 = vadd.f32 %v270_v51, %v269_v50 }
 0x28b   :  { %397 = vpush %v271_v52 }
 0x2bc   :  { %s398_s2 = spop %397 }
 0x2bd   :  { %s273_s4 = smul.f32 0.03125, %s398_s2 }
 0x2bf   :  { %v275_v55 = vstv %s273_s4 }
 0x2c0   :  { %v276_v56 = vsub.f32 %v274_v54, %v275_v55 }
 0x2c2   :  { %277 = vst [vmem:[#allocation8] sm:$0xff] %v276_v56 }
 0x2c3   :  { %485 = shalt.err (!%p482_p0)
}
 0x2c4   :  { %s486_s24 = scalar_lea.hbm %s624_s7, 128 }
 0x2c5   :  { %p487_p1 = scmp.ne.s32.totalorder %s624_s7, %s486_s24  ;;  %p490_p2 = scmp.lt.u32.totalorder %s486_s24, %s624_s7 }
 0x2c7   :  { %p492_p3 = pnand %p490_p2, %p487_p1 }
 0x2c9   :  { %495 = shalt.err (!%p492_p3)
}
 0x2ca   :  { %287 = dma.vmem_to_hbm [thread:$0]  %s285_s21, 128, %s624_s7, [#allocation4]  }
 0x2cb   :  { %500 = dma.done.wait [#allocation4], 128  }
 0x2cc   :  { %501 = vsyncadd [#allocation4], 4294967168 }
 0x2cd   :  { %291 = vsyncpa [#allocation3], 1 }
 0x2ce   :  { %292 = vsyncpa [#allocation6], 1 }
 0x2cf   :  { %293 = vsyncpa [#allocation4], 1 }

</bundles_post_ra>
